<compile_context>
chip_gen: v7x
topology: tpu7x:2x2x1
jax: 0.10.0
libtpu: 0.0.40
codegen_flags: <defaults>
</compile_context>

<pallas_src>
import functools

import jax
import jax.numpy as jnp
from jax.experimental import pallas as pl
from jax.experimental.pallas import tpu as pltpu


def _round_up(x, m):
    return (x + m - 1) // m * m


def _tpu_vmem_capacity_bytes():
    try:
        return int(pltpu.get_tpu_info().vmem_capacity_bytes)
    except Exception:
        return 64 * 1024 * 1024  # conservative default (v7x per-TC VMEM)


# ----------------------------------------------------------------------------
# Pallas kernel: fused complex matmul tile (2 MXU matmuls) + bias epilogue
# ----------------------------------------------------------------------------
def _cconv_kernel(pr_ref, pi_ref, wa_ref, wb_ref, b_ref, o_ref):
    # pr_ref/pi_ref: [TM, Kp]        bf16  (per-tile real / imag patches)
    # wa_ref:        [Kp, 2*Coutp]   bf16  resident  [ wr | wi ]
    # wb_ref:        [Kp, 2*Coutp]   bf16  resident  [-wi | wr ]
    # b_ref:         [1, 2*Coutp]    f32   resident pre-combined bias
    # o_ref:         [TM, 2*Coutp]   f32   lane-dense output slab (real|imag)
    acc = jnp.dot(pr_ref[...], wa_ref[...], preferred_element_type=jnp.float32)
    acc = acc + jnp.dot(pi_ref[...], wb_ref[...],
                        preferred_element_type=jnp.float32)
    o_ref[...] = acc + b_ref[...]


def _complex_matmul_pallas(pr, pi, wa, wb, b, tm, vmem_limit_bytes,
                           single_buffer_residents):
    m_pad, kp = pr.shape
    two_coutp = wa.shape[1]
    resident_kw = ({"pipeline_mode": pl.Buffered(1)}
                   if single_buffer_residents else {})
    in_specs = [
        pl.BlockSpec((tm, kp), lambda i: (i, 0)),            # real patches: tiled over M
        pl.BlockSpec((tm, kp), lambda i: (i, 0)),            # imag patches: tiled over M
        pl.BlockSpec((kp, two_coutp), lambda i: (0, 0), **resident_kw),  # weight A
        pl.BlockSpec((kp, two_coutp), lambda i: (0, 0), **resident_kw),  # weight B
        pl.BlockSpec((1, two_coutp), lambda i: (0, 0), **resident_kw),   # bias
    ]
    return pl.pallas_call(
        _cconv_kernel,
        out_shape=jax.ShapeDtypeStruct((m_pad, two_coutp), jnp.float32),
        grid=(m_pad // tm,),
        in_specs=in_specs,
        out_specs=pl.BlockSpec((tm, two_coutp), lambda i: (i, 0)),
        compiler_params=pltpu.CompilerParams(
            dimension_semantics=("parallel",),   # megacore-splittable on v7x
            vmem_limit_bytes=vmem_limit_bytes,
        ),
    )(pr, pi, wa, wb, b)


# ----------------------------------------------------------------------------
# CConv2d forward
# ----------------------------------------------------------------------------
@functools.partial(
    jax.jit,
    static_argnames=("kernel_size", "stride", "padding",
                     "single_buffer_residents"))
def cconv2d_forward(x, w_real, w_imag, b_real, b_imag,
                    kernel_size, stride, padding,
                    single_buffer_residents=True):
    """x: [N, Cin, H, W, 2]; w_*: [Cout, Cin, kh, kw]; b_*: [Cout]."""
    kh = kw = kernel_size
    N, Cin, H, W, _ = x.shape
    Cout = w_real.shape[0]
    K = Cin * kh * kw

    # --- im2col in bf16 (halves HBM traffic of the dominant staging array) ---
    x_bf = x.astype(jnp.bfloat16)
    xc = jnp.concatenate([x_bf[..., 0], x_bf[..., 1]], axis=0)  # [2N, Cin, H, W]
    xc = xc.transpose(0, 2, 3, 1)                               # NHWC
    patches = jax.lax.conv_general_dilated_patches(
        xc, filter_shape=(kh, kw), window_strides=(stride, stride),
        padding=[(padding, padding), (padding, padding)],
        dimension_numbers=("NHWC", "HWIO", "NHWC"))
    # patches: [2N, Ho, Wo, Cin*kh*kw] bf16, feature order = (Cin, kh, kw)
    Ho, Wo = patches.shape[1], patches.shape[2]
    M = N * Ho * Wo

    # --- MXU / lane-friendly padded sizes ------------------------------------
    Kp = _round_up(K, 128)        # each patch half is its own lane dim -> 128
    Coutp = _round_up(Cout, 64)   # 2*Coutp -> multiple of 128 (lane-dense)
    # TODO(synk): when MXU-bound on v6e/v7x, pad Coutp to 128 (256-wide MXU tile).

    # --- tile size (TM) + VMEM budget, chip-aware -----------------------------
    vmem_cap = _tpu_vmem_capacity_bytes()
    vmem_limit = min(max(32 * 1024 * 1024, vmem_cap // 2), 96 * 1024 * 1024)
    tm_cap = 1024 if vmem_cap >= 100 * 1024 * 1024 else 512
    # >= 2 "parallel" grid steps whenever possible so both v7x TCs get work.
    tm = min(tm_cap, max(16, _round_up((M + 1) // 2, 16)))

    def _vmem_use(t):
        resident = (2 * Kp * 2 * Coutp * 2 + 2 * Coutp * 4) * (
            1 if single_buffer_residents else 2)
        patch_bufs = 2 * 2 * t * Kp * 2      # pr + pi, double-buffered, bf16
        out_bufs = 2 * t * 2 * Coutp * 4     # f32 output, double-buffered
        return resident + patch_bufs + out_bufs

    while tm > 16 and _vmem_use(tm) > (vmem_limit * 3) // 4:
        tm = max(16, _round_up(tm // 2, 16))
    M_pad = _round_up(M, tm)
    # TODO(synk): add a K-reduction grid axis (f32 accumulator scratch +
    # pl.when init/finalize) when the resident weight no longer fits VMEM
    # (very large Cin); not needed for DCUnet-scale channel counts.

    pr = jnp.pad(patches[:N].reshape(M, K), ((0, M_pad - M), (0, Kp - K)))
    pi = jnp.pad(patches[N:].reshape(M, K), ((0, M_pad - M), (0, Kp - K)))

    # --- fused complex weights, built directly in bf16 (no f32 scatters) ------
    #   wa = [ wr | wi ],  wb = [ -wi | wr ]
    wr = w_real.reshape(Cout, K).T                       # [K, Cout]
    wi = w_imag.reshape(Cout, K).T
    padw = lambda a: jnp.pad(a, ((0, Kp - K), (0, Coutp - Cout)))
    wa = jnp.concatenate([padw(wr), padw(wi)], axis=1).astype(jnp.bfloat16)
    wb = jnp.concatenate([padw(-wi), padw(wr)], axis=1).astype(jnp.bfloat16)

    # --- pre-combined biases (each PyTorch conv adds its own bias once) -------
    padb = lambda a: jnp.pad(a, (0, Coutp - Cout))
    b_big = jnp.concatenate([padb(b_real - b_imag),
                             padb(b_real + b_imag)])[None, :].astype(jnp.float32)

    out = _complex_matmul_pallas(pr, pi, wa, wb, b_big, tm, vmem_limit,
                                 single_buffer_residents)   # [M_pad, 2*Coutp]
    out = out[:M]

    # --- lane-dense epilogue: transpose real/imag separately, stack last ------
    c_real = out[:, :Cout].reshape(N, Ho, Wo, Cout).transpose(0, 3, 1, 2)
    c_im = out[:, Coutp:Coutp + Cout].reshape(N, Ho, Wo, Cout).transpose(0, 3, 1, 2)
    # TODO(synk): an NHWC(+complex) public layout (and bf16 output) would drop
    # this transpose entirely / halve the store stream if downstream allows it.
    return jnp.stack([c_real, c_im], axis=-1)               # [N, Cout, Ho, Wo, 2]


# ----------------------------------------------------------------------------
# Pure-JAX reference (for correctness check)
# ----------------------------------------------------------------------------
def _ref_conv(x, w, b, stride, padding):
    out = jax.lax.conv_general_dilated(
        x, w, window_strides=(stride, stride),
        padding=[(padding, padding), (padding, padding)],
        dimension_numbers=("NCHW", "OIHW", "NCHW"))
    return out + b[None, :, None, None]


def cconv2d_reference(x, w_real, w_imag, b_real, b_imag, stride, padding):
    x_real, x_im = x[..., 0], x[..., 1]
    c_real = (_ref_conv(x_real, w_real, b_real, stride, padding)
              - _ref_conv(x_im, w_imag, b_imag, stride, padding))
    c_im = (_ref_conv(x_real, w_imag, b_imag, stride, padding)
            + _ref_conv(x_im, w_real, b_real, stride, padding))
    return jnp.stack([c_real, c_im], axis=-1)


# ----------------------------------------------------------------------------
if __name__ == "__main__":
    # Module hyper-params (small but representative).
    N, Cin, H, W = 2, 4, 16, 16
    Cout, ksize, stride, padding = 8, 3, 2, 1

    key = jax.random.PRNGKey(0)
    k_x, k_wr, k_wi, k_br, k_bi = jax.random.split(key, 5)

    # xavier_uniform-style weights, PyTorch-default uniform(+-1/sqrt(fan_in)) biases.
    fan_in = Cin * ksize * ksize
    fan_out = Cout * ksize * ksize
    limit_w = jnp.sqrt(6.0 / (fan_in + fan_out))
    limit_b = 1.0 / jnp.sqrt(fan_in)

    w_real = jax.random.uniform(k_wr, (Cout, Cin, ksize, ksize),
                                jnp.float32, -limit_w, limit_w)
    w_imag = jax.random.uniform(k_wi, (Cout, Cin, ksize, ksize),
                                jnp.float32, -limit_w, limit_w)
    b_real = jax.random.uniform(k_br, (Cout,), jnp.float32, -limit_b, limit_b)
    b_imag = jax.random.uniform(k_bi, (Cout,), jnp.float32, -limit_b, limit_b)

    x = jax.random.normal(k_x, (N, Cin, H, W, 2), jnp.float32)

    run = functools.partial(cconv2d_forward, x, w_real, w_imag, b_real, b_imag,
                            kernel_size=ksize, stride=stride, padding=padding)
    try:
        out = jax.block_until_ready(run(single_buffer_residents=True))
    except Exception:
        # Fallback if this Pallas build rejects Buffered(1) single-buffering
        # of the resident weight/bias operands.
        out = jax.block_until_ready(run(single_buffer_residents=False))

    # 1) Full-precision reference; tolerance sized for the intentional bf16
    #    quantization of patches/weights (accumulation is f32 on the MXU).
    ref = cconv2d_reference(x, w_real, w_imag, b_real, b_imag, stride, padding)
    ref = jax.block_until_ready(ref)
    assert out.shape == ref.shape, (out.shape, ref.shape)
    assert jnp.allclose(out, ref, atol=3e-2, rtol=3e-2), float(
        jnp.max(jnp.abs(out - ref)))

    # 2) Quantization-matched reference (inputs/weights rounded to bf16, f32
    #    accumulation) -> must agree tightly; validates the kernel math and
    #    the (Cin, kh, kw) patch-feature ordering assumption.
    bf = lambda a: a.astype(jnp.bfloat16).astype(jnp.float32)
    ref_q = cconv2d_reference(bf(x), bf(w_real), bf(w_imag), b_real, b_imag,
                              stride, padding)
    ref_q = jax.block_until_ready(ref_q)
    assert jnp.allclose(out, ref_q, atol=2e-3, rtol=2e-3), float(
        jnp.max(jnp.abs(out - ref_q)))

    print("KERNEL_OK")
</pallas_src>

<mosaic_0001>
module attributes {stable_mosaic.version = 11 : i64} {
  func.func @_cconv_kernel(%arg0: i32, %arg1: memref<64x128xbf16, #tpu.memory_space<vmem>>, %arg2: memref<64x128xbf16, #tpu.memory_space<vmem>>, %arg3: memref<128x128xbf16, #tpu.memory_space<vmem>>, %arg4: memref<128x128xbf16, #tpu.memory_space<vmem>>, %arg5: memref<1x128xf32, #tpu.memory_space<vmem>>, %arg6: memref<64x128xf32, #tpu.memory_space<vmem>>) attributes {dimension_semantics = [#tpu.dimension_semantics<parallel>], iteration_bounds = array<i64: 2>, scalar_prefetch = 0 : i64, scratch_operands = 0 : i64, tpu.core_type = #tpu.core_type<tc>, window_params = [{transform_indices = @transform_0, window_bounds = array<i64: 64, 128>}, {transform_indices = @transform_1, window_bounds = array<i64: 64, 128>}, {pipeline_mode = #tpu.pipeline_mode<synchronous>, transform_indices = @transform_2, window_bounds = array<i64: 128, 128>}, {pipeline_mode = #tpu.pipeline_mode<synchronous>, transform_indices = @transform_3, window_bounds = array<i64: 128, 128>}, {pipeline_mode = #tpu.pipeline_mode<synchronous>, transform_indices = @transform_4, window_bounds = array<i64: 1, 128>}, {transform_indices = @transform_5, window_bounds = array<i64: 64, 128>}]} {
    %c0 = arith.constant 0 : index
    %c0_0 = arith.constant 0 : index
    %0 = vector.load %arg1[%c0, %c0_0] : memref<64x128xbf16, #tpu.memory_space<vmem>>, vector<64x128xbf16>
    %c0_1 = arith.constant 0 : index
    %c0_2 = arith.constant 0 : index
    %1 = vector.load %arg3[%c0_1, %c0_2] : memref<128x128xbf16, #tpu.memory_space<vmem>>, vector<128x128xbf16>
    %cst = arith.constant dense<0.000000e+00> : vector<64x128xf32>
    %2 = tpu.matmul %0, %1, %cst {dimension_numbers = #tpu.dot_dimension_numbers<[1], [0], [0], [1], [0, 0, 1, 1], [], []>} : vector<64x128xbf16>, vector<128x128xbf16>, vector<64x128xf32> -> vector<64x128xf32>
    %c0_3 = arith.constant 0 : index
    %c0_4 = arith.constant 0 : index
    %3 = vector.load %arg2[%c0_3, %c0_4] : memref<64x128xbf16, #tpu.memory_space<vmem>>, vector<64x128xbf16>
    %c0_5 = arith.constant 0 : index
    %c0_6 = arith.constant 0 : index
    %4 = vector.load %arg4[%c0_5, %c0_6] : memref<128x128xbf16, #tpu.memory_space<vmem>>, vector<128x128xbf16>
    %cst_7 = arith.constant dense<0.000000e+00> : vector<64x128xf32>
    %5 = tpu.matmul %3, %4, %cst_7 {dimension_numbers = #tpu.dot_dimension_numbers<[1], [0], [0], [1], [0, 0, 1, 1], [], []>} : vector<64x128xbf16>, vector<128x128xbf16>, vector<64x128xf32> -> vector<64x128xf32>
    %6 = arith.addf %2, %5 : vector<64x128xf32>
    %c0_8 = arith.constant 0 : index
    %c0_9 = arith.constant 0 : index
    %7 = vector.load %arg5[%c0_8, %c0_9] : memref<1x128xf32, #tpu.memory_space<vmem>>, vector<1x128xf32>
    %8 = vector.broadcast %7 : vector<1x128xf32> to vector<64x128xf32>
    %9 = arith.addf %6, %8 : vector<64x128xf32>
    %c0_10 = arith.constant 0 : index
    %c0_11 = arith.constant 0 : index
    %10 = vector.load %arg6[%c0_10, %c0_11] : memref<64x128xf32, #tpu.memory_space<vmem>>, vector<64x128xf32>
    tpu.vector_store %arg6[%c0_10, %c0_11], %9 {strides = array<i32>} : memref<64x128xf32, #tpu.memory_space<vmem>>, vector<64x128xf32>,
    return
  }
  func.func @transform_0(%arg0: i32) -> (i32, i32) {
    %c0_i32 = arith.constant 0 : i32
    %c0_i32_0 = arith.constant 0 : i32
    return %arg0, %c0_i32 : i32, i32
  }
  func.func @transform_1(%arg0: i32) -> (i32, i32) {
    %c0_i32 = arith.constant 0 : i32
    %c0_i32_0 = arith.constant 0 : i32
    return %arg0, %c0_i32 : i32, i32
  }
  func.func @transform_2(%arg0: i32) -> (i32, i32) {
    %c0_i32 = arith.constant 0 : i32
    %c0_i32_0 = arith.constant 0 : i32
    %c0_i32_1 = arith.constant 0 : i32
    return %c0_i32, %c0_i32_0 : i32, i32
  }
  func.func @transform_3(%arg0: i32) -> (i32, i32) {
    %c0_i32 = arith.constant 0 : i32
    %c0_i32_0 = arith.constant 0 : i32
    %c0_i32_1 = arith.constant 0 : i32
    return %c0_i32, %c0_i32_0 : i32, i32
  }
  func.func @transform_4(%arg0: i32) -> (i32, i32) {
    %c0_i32 = arith.constant 0 : i32
    %c0_i32_0 = arith.constant 0 : i32
    %c0_i32_1 = arith.constant 0 : i32
    return %c0_i32, %c0_i32_0 : i32, i32
  }
  func.func @transform_5(%arg0: i32) -> (i32, i32) {
    %c0_i32 = arith.constant 0 : i32
    %c0_i32_0 = arith.constant 0 : i32
    return %arg0, %c0_i32 : i32, i32
  }
}

module attributes {stable_mosaic.version = 11 : i64} {
  func.func @_cconv_kernel(%arg0: i32, %arg1: memref<64x128xbf16, #tpu.memory_space<vmem>>, %arg2: memref<64x128xbf16, #tpu.memory_space<vmem>>, %arg3: memref<128x128xbf16, #tpu.memory_space<vmem>>, %arg4: memref<128x128xbf16, #tpu.memory_space<vmem>>, %arg5: memref<1x128xf32, #tpu.memory_space<vmem>>, %arg6: memref<64x128xf32, #tpu.memory_space<vmem>>) attributes {dimension_semantics = [#tpu.dimension_semantics<parallel>], iteration_bounds = array<i64: 2>, scalar_prefetch = 0 : i64, scratch_operands = 0 : i64, tpu.core_type = #tpu.core_type<tc>, window_params = [{transform_indices = @transform_0, window_bounds = array<i64: 64, 128>}, {transform_indices = @transform_1, window_bounds = array<i64: 64, 128>}, {pipeline_mode = #tpu.pipeline_mode<synchronous>, transform_indices = @transform_2, window_bounds = array<i64: 128, 128>}, {pipeline_mode = #tpu.pipeline_mode<synchronous>, transform_indices = @transform_3, window_bounds = array<i64: 128, 128>}, {pipeline_mode = #tpu.pipeline_mode<synchronous>, transform_indices = @transform_4, window_bounds = array<i64: 1, 128>}, {transform_indices = @transform_5, window_bounds = array<i64: 64, 128>}]} {
    %c0 = arith.constant 0 : index
    %c0_0 = arith.constant 0 : index
    %0 = vector.load %arg1[%c0, %c0_0] : memref<64x128xbf16, #tpu.memory_space<vmem>>, vector<64x128xbf16>
    %c0_1 = arith.constant 0 : index
    %c0_2 = arith.constant 0 : index
    %1 = vector.load %arg3[%c0_1, %c0_2] : memref<128x128xbf16, #tpu.memory_space<vmem>>, vector<128x128xbf16>
    %cst = arith.constant dense<0.000000e+00> : vector<64x128xf32>
    %2 = tpu.matmul %0, %1, %cst {dimension_numbers = #tpu.dot_dimension_numbers<[1], [0], [0], [1], [0, 0, 1, 1], [], []>} : vector<64x128xbf16>, vector<128x128xbf16>, vector<64x128xf32> -> vector<64x128xf32>
    %c0_3 = arith.constant 0 : index
    %c0_4 = arith.constant 0 : index
    %3 = vector.load %arg2[%c0_3, %c0_4] : memref<64x128xbf16, #tpu.memory_space<vmem>>, vector<64x128xbf16>
    %c0_5 = arith.constant 0 : index
    %c0_6 = arith.constant 0 : index
    %4 = vector.load %arg4[%c0_5, %c0_6] : memref<128x128xbf16, #tpu.memory_space<vmem>>, vector<128x128xbf16>
    %cst_7 = arith.constant dense<0.000000e+00> : vector<64x128xf32>
    %5 = tpu.matmul %3, %4, %cst_7 {dimension_numbers = #tpu.dot_dimension_numbers<[1], [0], [0], [1], [0, 0, 1, 1], [], []>} : vector<64x128xbf16>, vector<128x128xbf16>, vector<64x128xf32> -> vector<64x128xf32>
    %6 = arith.addf %2, %5 : vector<64x128xf32>
    %c0_8 = arith.constant 0 : index
    %c0_9 = arith.constant 0 : index
    %7 = vector.load %arg5[%c0_8, %c0_9] : memref<1x128xf32, #tpu.memory_space<vmem>>, vector<1x128xf32>
    %8 = vector.broadcast %7 : vector<1x128xf32> to vector<64x128xf32>
    %9 = arith.addf %6, %8 : vector<64x128xf32>
    %c0_10 = arith.constant 0 : index
    %c0_11 = arith.constant 0 : index
    %10 = vector.load %arg6[%c0_10, %c0_11] : memref<64x128xf32, #tpu.memory_space<vmem>>, vector<64x128xf32>
    tpu.vector_store %arg6[%c0_10, %c0_11], %9 {strides = array<i32>} : memref<64x128xf32, #tpu.memory_space<vmem>>, vector<64x128xf32>,
    return
  }
  func.func @transform_0(%arg0: i32) -> (i32, i32) {
    %c0_i32 = arith.constant 0 : i32
    %c0_i32_0 = arith.constant 0 : i32
    return %arg0, %c0_i32 : i32, i32
  }
  func.func @transform_1(%arg0: i32) -> (i32, i32) {
    %c0_i32 = arith.constant 0 : i32
    %c0_i32_0 = arith.constant 0 : i32
    return %arg0, %c0_i32 : i32, i32
  }
  func.func @transform_2(%arg0: i32) -> (i32, i32) {
    %c0_i32 = arith.constant 0 : i32
    %c0_i32_0 = arith.constant 0 : i32
    %c0_i32_1 = arith.constant 0 : i32
    return %c0_i32, %c0_i32_0 : i32, i32
  }
  func.func @transform_3(%arg0: i32) -> (i32, i32) {
    %c0_i32 = arith.constant 0 : i32
    %c0_i32_0 = arith.constant 0 : i32
    %c0_i32_1 = arith.constant 0 : i32
    return %c0_i32, %c0_i32_0 : i32, i32
  }
  func.func @transform_4(%arg0: i32) -> (i32, i32) {
    %c0_i32 = arith.constant 0 : i32
    %c0_i32_0 = arith.constant 0 : i32
    %c0_i32_1 = arith.constant 0 : i32
    return %c0_i32, %c0_i32_0 : i32, i32
  }
  func.func @transform_5(%arg0: i32) -> (i32, i32) {
    %c0_i32 = arith.constant 0 : i32
    %c0_i32_0 = arith.constant 0 : i32
    return %arg0, %c0_i32 : i32, i32
  }
}

</mosaic_0001>

<bundles_post_ra>
// kernel: cconv2d_forward.1
= control target key start
LH: loop header
LB: loop body
LE: loop exit
PB: predicated region body
PF: predicated region fallthrough
CT: control target
= control target key end

     0   :  { %s852_s18 = smov 0   ;;  %s949_s0 = inlined_call_operand.vmem [shape: bf16[128,128], index: 0, kind: input, shape index: {}]   ;;  %s950_s1 = inlined_call_operand.vmem [shape: bf16[128,128], index: 1, kind: input, shape index: {}]   ;;  %s951_s2 = inlined_call_operand.vmem [shape: bf16[128,128], index: 2, kind: input, shape index: {}]   ;;  %s952_s3 = inlined_call_operand.vmem [shape: bf16[128,128], index: 3, kind: input, shape index: {}]   ;;  %s953_s4 = inlined_call_operand.vmem [shape: f32[1,128], index: 4, kind: input, shape index: {}]   ;;  %s954_s5 = inlined_call_operand.vmem [shape: f32[128,128], index: 5, kind: output, shape index: {}]  }
   0x1 LB: > { %s664_s19 = sadd.s32 4294967295, %s820_s18   ;;  %p668_p0 = scmp.ge.s32.totalorder %s820_s18, 1  ;;  %s820_s18 = sphi %s852_s18, %s15_s18  }
   0x2   : > { %p199_p1 = scmp.lt.s32.totalorder %s820_s18, 3 }
   0x4   : > { %p200_p2 = pnand %p668_p0, %p199_p1 }
   0x5   : > { %v790_v0 = vld [vmem:[%s952_s3] sm:$0xff] (!%p200_p2)   ;;  %s669_s22 = sshll.u32 (!%p200_p2), %s664_s19, 3  ;;  %v792_v2 = vld [vmem:[%s952_s3 + $0x8] sm:$0xff] (!%p200_p2)   ;;  %v794_v4 = vld [vmem:[%s952_s3 + $0x10] sm:$0xff] (!%p200_p2)  }
   0x6   : > { %203 = sbr.rel (%p200_p2) target bundleno = 267 (0x10b), region = 40  ;;  %v791_v1 = vld [vmem:[%s951_s2] sm:$0xff] (!%p200_p2)   ;;  %726 = vmatprep.subr.bf16.mxu1 (!%p200_p2), %v790_v0  ;;  %p233_p3 = scmp.lt.s32.totalorder (!%p200_p2), %s669_s22, 15  ;;  %v793_v3 = vld [vmem:[%s951_s2 + $0x8] sm:$0xff] (!%p200_p2)   ;;  %v795_v5 = vld [vmem:[%s951_s2 + $0x10] sm:$0xff] (!%p200_p2)  }
   0x7   : > { %750 = vmatprep.subr.bf16.mxu0 (!%p200_p2), %v791_v1  ;;  %727 = vmatpush3.bf16.msra.mxu1 (!%p200_p2), %v790_v0  ;;  %v796_v6 = vld [vmem:[%s952_s3 + $0x18] sm:$0xff] (!%p200_p2)   ;;  %v798_v8 = vld [vmem:[%s952_s3 + $0x20] sm:$0xff] (!%p200_p2)   ;;  %v800_v10 = vld [vmem:[%s952_s3 + $0x28] sm:$0xff] (!%p200_p2)  }
   0x8   : > { %751 = vmatpush3.bf16.msra.mxu0 (!%p200_p2), %v791_v1  ;;  %728 = vmatprep.subr.bf16.mxu1 (!%p200_p2), %v792_v2  ;;  %v797_v7 = vld [vmem:[%s951_s2 + $0x18] sm:$0xff] (!%p200_p2)   ;;  %v799_v9 = vld [vmem:[%s951_s2 + $0x20] sm:$0xff] (!%p200_p2)   ;;  %v801_v11 = vld [vmem:[%s951_s2 + $0x28] sm:$0xff] (!%p200_p2)  }
   0x9   : > { %752 = vmatprep.subr.bf16.mxu0 (!%p200_p2), %v793_v3  ;;  %v802_v14 = vld [vmem:[%s952_s3 + $0x30] sm:$0xff] (!%p200_p2)   ;;  %v804_v16 = vld [vmem:[%s952_s3 + $0x38] sm:$0xff] (!%p200_p2)   ;;  %v699_v26 = vld [vmem:[%s953_s4] ss:$0 sm:$0xff] (!%p200_p2) }
   0xa   : > { %v803_v15 = vld [vmem:[%s951_s2 + $0x30] sm:$0xff] (!%p200_p2)   ;;  %v805_v17 = vld [vmem:[%s951_s2 + $0x38] sm:$0xff] (!%p200_p2)  }
   0xb   : > { %729 = vmatpush3.bf16.msra.mxu1 (!%p200_p2), %v792_v2 }
   0xc   : > { %753 = vmatpush3.bf16.msra.mxu0 (!%p200_p2), %v793_v3  ;;  %730 = vmatprep.subr.bf16.mxu1 (!%p200_p2), %v794_v4 }
   0xd   : > { %s956_s22 = smov (!%p233_p3, %s669_s22), 15  ;;  %754 = vmatprep.subr.bf16.mxu0 %v795_v5 }
   0xe   : > { %s670_s12 = sshll.u32 %s956_s22, 2 }
   0xf   : > { %731 = vmatpush3.bf16.msra.mxu1 %v794_v4  ;;  %s896_s20 = scalar_lea.vmem %s950_s1, %s670_s12  ;;  %s904_s26 = scalar_lea.vmem %s949_s0, %s670_s12 }
  0x10   : > { %755 = vmatpush3.bf16.msra.mxu0 %v795_v5  ;;  %732 = vmatprep.subr.bf16.mxu1 %v796_v6  ;;  %v806_v12 = vld [vmem:[%s896_s20] sm:$0xff]   ;;  %v808_v18 = vld [vmem:[%s896_s20 + $0x8] sm:$0xff]   ;;  %v810_v20 = vld [vmem:[%s896_s20 + $0x10] sm:$0xff]   ;;  %s674_s12 = sshll.u32 %s956_s22, 3 }
  0x11   : > { %756 = vmatprep.subr.bf16.mxu0 %v797_v7  ;;  %v807_v13 = vld [vmem:[%s904_s26] sm:$0xff]   ;;  %742 = vmatprep.mubr.bf16.mxu1 %v806_v12  ;;  %v809_v19 = vld [vmem:[%s904_s26 + $0x8] sm:$0xff]   ;;  %v811_v21 = vld [vmem:[%s904_s26 + $0x10] sm:$0xff]   ;;  %s936_s17 = scalar_lea.vmem %s954_s5, %s674_s12 }
  0x12   : > { %766 = vmatprep.mubr.bf16.mxu0 %v807_v13  ;;  %v812_v22 = vld [vmem:[%s896_s20 + $0x18] sm:$0xff]  }
  0x13   : > { %733 = vmatpush3.bf16.msra.mxu1 %v796_v6  ;;  %v813_v23 = vld [vmem:[%s904_s26 + $0x18] sm:$0xff]  }
  0x14   : > { %757 = vmatpush3.bf16.msra.mxu0 %v797_v7  ;;  %734 = vmatprep.subr.bf16.mxu1 %v798_v8 }
  0x15   : > { %758 = vmatprep.subr.bf16.mxu0 %v799_v9 }
  0x17   : > { %735 = vmatpush3.bf16.msra.mxu1 %v798_v8 }
  0x18   : > { %759 = vmatpush3.bf16.msra.mxu0 %v799_v9  ;;  %736 = vmatprep.subr.bf16.mxu1 %v800_v10 }
  0x19   : > { %760 = vmatprep.subr.bf16.mxu0 %v801_v11 }
  0x1b   : > { %737 = vmatpush3.bf16.msra.mxu1 %v800_v10 }
  0x1c   : > { %761 = vmatpush3.bf16.msra.mxu0 %v801_v11  ;;  %738 = vmatprep.subr.bf16.mxu1 %v802_v14 }
  0x1d   : > { %762 = vmatprep.subr.bf16.mxu0 %v803_v15 }
  0x1f   : > { %739 = vmatpush3.bf16.msra.mxu1 %v802_v14 }
  0x20   : > { %763 = vmatpush3.bf16.msra.mxu0 %v803_v15  ;;  %740 = vmatprep.subr.bf16.mxu1 %v804_v16 }
  0x21   : > { %764 = vmatprep.subr.bf16.mxu0 %v805_v17 }
  0x23   : > { %741 = vmatpush3.bf16.msra.mxu1 %v804_v16 }
  0x24   : > { %765 = vmatpush3.bf16.msra.mxu0 %v805_v17 }
  0x26   : > { %743 = vmatmul.mubr.bf16.vlgmr.msra.gmra.mrb[0].mxu1 %v808_v18 }
  0x27   : > { %767 = vmatmul.mubr.bf16.vlgmr.msra.gmra.mrb[0].mxu0 %v809_v19  ;;  %746 = vmatprep.mubr.bf16.mxu1 %v810_v20 }
  0x28   : > { %770 = vmatprep.mubr.bf16.mxu0 %v811_v21 }
  0x2e   : > { %747 = vmatmul.mubr.bf16.gmra.mrb[4].mxu1 %v812_v22 }
  0x2f   : > { %771 = vmatmul.mubr.bf16.gmra.mrb[4].mxu0 %v813_v23 }
  0xf9   : > { %v744_v24 = vpop.f32.mrb[0].mxu1 }
  0xfa   : > { %v768_v25 = vpop.f32.mrb[0].mxu0  ;;  %v405_v27 = vpop.f32.mrb[1].mxu1 }
  0xfb   : > { %v551_v28 = vadd.f32 %v768_v25, %v744_v24  ;;  %v542_v29 = vpop.f32.mrb[1].mxu0  ;;  %v745_v30 = vpop.f32.mrb[2].mxu1 }
  0xfc   : > { %v543_v31 = vadd.f32 %v542_v29, %v405_v27  ;;  %v769_v32 = vpop.f32.mrb[2].mxu0  ;;  %v408_v33 = vpop.f32.mrb[3].mxu1 }
  0xfd   : > { %v582_v34 = vadd.f32 %v699_v26, %v551_v28  ;;  %v554_v35 = vadd.f32 %v769_v32, %v745_v30  ;;  %v545_v36 = vpop.f32.mrb[3].mxu0 }
  0xfe   : > { %v580_v37 = vadd.f32 %v699_v26, %v543_v31  ;;  %v546_v38 = vadd.f32 %v545_v36, %v408_v33 }
  0xff   : > { %590 = vst [vmem:[%s936_s17 + $0x10] sm:$0xff] %v582_v34  ;;  %v583_v39 = vadd.f32 %v699_v26, %v554_v35 }
 0x100   : > { %588 = vst [vmem:[%s936_s17] sm:$0xff] %v580_v37  ;;  %v581_v40 = vadd.f32 %v699_v26, %v546_v38 }
 0x101   : > { %591 = vst [vmem:[%s936_s17 + $0x18] sm:$0xff] %v583_v39  ;;  %v748_v41 = vpop.f32.mrb[4].mxu1 }
 0x102   : > { %589 = vst [vmem:[%s936_s17 + $0x8] sm:$0xff] %v581_v40  ;;  %v772_v42 = vpop.f32.mrb[4].mxu0  ;;  %v421_v43 = vpop.f32.mrb[5].mxu1 }
 0x103   : > { %v567_v44 = vadd.f32 %v772_v42, %v748_v41  ;;  %v558_v45 = vpop.f32.mrb[5].mxu0  ;;  %v749_v46 = vpop.f32.mrb[6].mxu1 }
 0x104   : > { %v559_v47 = vadd.f32 %v558_v45, %v421_v43  ;;  %v773_v48 = vpop.f32.mrb[6].mxu0  ;;  %v424_v49 = vpop.f32.mrb[7].mxu1 }
 0x105   : > { %v586_v50 = vadd.f32 %v699_v26, %v567_v44  ;;  %v570_v51 = vadd.f32 %v773_v48, %v749_v46  ;;  %v561_v52 = vpop.f32.mrb[7].mxu0 }
 0x106   : > { %v584_v53 = vadd.f32 %v699_v26, %v559_v47  ;;  %v562_v54 = vadd.f32 %v561_v52, %v424_v49 }
 0x107   : > { %594 = vst [vmem:[%s936_s17 + $0x30] sm:$0xff] %v586_v50  ;;  %v587_v55 = vadd.f32 %v699_v26, %v570_v51 }
 0x108   : > { %592 = vst [vmem:[%s936_s17 + $0x20] sm:$0xff] %v584_v53  ;;  %v585_v56 = vadd.f32 %v699_v26, %v562_v54 }
 0x109   : > { %595 = vst [vmem:[%s936_s17 + $0x38] sm:$0xff] %v587_v55 }
 0x10a   : > { %593 = vst [vmem:[%s936_s17 + $0x28] sm:$0xff] %v585_v56 }
 0x10b PF: > { %s15_s18 = sadd.s32 1, %s820_s18  }
 0x10c   : > { %p12_p4 = scmp.ge.s32.totalorder %s15_s18, 4  }
 0x10e   :  { %14 = sbr.rel (!%p12_p4) target bundleno = 1 (0x1), region = 73 }

// kernel: cconv2d_forward.1
= control target key start
LH: loop header
LB: loop body
LE: loop exit
PB: predicated region body
PF: predicated region fallthrough
CT: control target
= control target key end

     0   :  { %s852_s18 = smov 0   ;;  %s949_s0 = inlined_call_operand.vmem [shape: bf16[128,128], index: 0, kind: input, shape index: {}]   ;;  %s950_s1 = inlined_call_operand.vmem [shape: bf16[128,128], index: 1, kind: input, shape index: {}]   ;;  %s951_s2 = inlined_call_operand.vmem [shape: bf16[128,128], index: 2, kind: input, shape index: {}]   ;;  %s952_s3 = inlined_call_operand.vmem [shape: bf16[128,128], index: 3, kind: input, shape index: {}]   ;;  %s953_s4 = inlined_call_operand.vmem [shape: f32[1,128], index: 4, kind: input, shape index: {}]   ;;  %s954_s5 = inlined_call_operand.vmem [shape: f32[128,128], index: 5, kind: output, shape index: {}]  }
   0x1 LB: > { %s664_s19 = sadd.s32 4294967295, %s820_s18   ;;  %p668_p0 = scmp.ge.s32.totalorder %s820_s18, 1  ;;  %s820_s18 = sphi %s852_s18, %s15_s18  }
   0x2   : > { %p199_p1 = scmp.lt.s32.totalorder %s820_s18, 3 }
   0x4   : > { %p200_p2 = pnand %p668_p0, %p199_p1 }
   0x5   : > { %v790_v0 = vld [vmem:[%s952_s3] sm:$0xff] (!%p200_p2)   ;;  %s669_s22 = sshll.u32 (!%p200_p2), %s664_s19, 3  ;;  %v792_v2 = vld [vmem:[%s952_s3 + $0x8] sm:$0xff] (!%p200_p2)   ;;  %v794_v4 = vld [vmem:[%s952_s3 + $0x10] sm:$0xff] (!%p200_p2)  }
   0x6   : > { %203 = sbr.rel (%p200_p2) target bundleno = 267 (0x10b), region = 40  ;;  %v791_v1 = vld [vmem:[%s951_s2] sm:$0xff] (!%p200_p2)   ;;  %726 = vmatprep.subr.bf16.mxu1 (!%p200_p2), %v790_v0  ;;  %p233_p3 = scmp.lt.s32.totalorder (!%p200_p2), %s669_s22, 15  ;;  %v793_v3 = vld [vmem:[%s951_s2 + $0x8] sm:$0xff] (!%p200_p2)   ;;  %v795_v5 = vld [vmem:[%s951_s2 + $0x10] sm:$0xff] (!%p200_p2)  }
   0x7   : > { %750 = vmatprep.subr.bf16.mxu0 (!%p200_p2), %v791_v1  ;;  %727 = vmatpush3.bf16.msra.mxu1 (!%p200_p2), %v790_v0  ;;  %v796_v6 = vld [vmem:[%s952_s3 + $0x18] sm:$0xff] (!%p200_p2)   ;;  %v798_v8 = vld [vmem:[%s952_s3 + $0x20] sm:$0xff] (!%p200_p2)   ;;  %v800_v10 = vld [vmem:[%s952_s3 + $0x28] sm:$0xff] (!%p200_p2)  }
   0x8   : > { %751 = vmatpush3.bf16.msra.mxu0 (!%p200_p2), %v791_v1  ;;  %728 = vmatprep.subr.bf16.mxu1 (!%p200_p2), %v792_v2  ;;  %v797_v7 = vld [vmem:[%s951_s2 + $0x18] sm:$0xff] (!%p200_p2)   ;;  %v799_v9 = vld [vmem:[%s951_s2 + $0x20] sm:$0xff] (!%p200_p2)   ;;  %v801_v11 = vld [vmem:[%s951_s2 + $0x28] sm:$0xff] (!%p200_p2)  }
   0x9   : > { %752 = vmatprep.subr.bf16.mxu0 (!%p200_p2), %v793_v3  ;;  %v802_v14 = vld [vmem:[%s952_s3 + $0x30] sm:$0xff] (!%p200_p2)   ;;  %v804_v16 = vld [vmem:[%s952_s3 + $0x38] sm:$0xff] (!%p200_p2)   ;;  %v699_v26 = vld [vmem:[%s953_s4] ss:$0 sm:$0xff] (!%p200_p2) }
   0xa   : > { %v803_v15 = vld [vmem:[%s951_s2 + $0x30] sm:$0xff] (!%p200_p2)   ;;  %v805_v17 = vld [vmem:[%s951_s2 + $0x38] sm:$0xff] (!%p200_p2)  }
   0xb   : > { %729 = vmatpush3.bf16.msra.mxu1 (!%p200_p2), %v792_v2 }
   0xc   : > { %753 = vmatpush3.bf16.msra.mxu0 (!%p200_p2), %v793_v3  ;;  %730 = vmatprep.subr.bf16.mxu1 (!%p200_p2), %v794_v4 }
   0xd   : > { %s956_s22 = smov (!%p233_p3, %s669_s22), 15  ;;  %754 = vmatprep.subr.bf16.mxu0 %v795_v5 }
   0xe   : > { %s670_s12 = sshll.u32 %s956_s22, 2 }
   0xf   : > { %731 = vmatpush3.bf16.msra.mxu1 %v794_v4  ;;  %s896_s20 = scalar_lea.vmem %s950_s1, %s670_s12  ;;  %s904_s26 = scalar_lea.vmem %s949_s0, %s670_s12 }
  0x10   : > { %755 = vmatpush3.bf16.msra.mxu0 %v795_v5  ;;  %732 = vmatprep.subr.bf16.mxu1 %v796_v6  ;;  %v806_v12 = vld [vmem:[%s896_s20] sm:$0xff]   ;;  %v808_v18 = vld [vmem:[%s896_s20 + $0x8] sm:$0xff]   ;;  %v810_v20 = vld [vmem:[%s896_s20 + $0x10] sm:$0xff]   ;;  %s674_s12 = sshll.u32 %s956_s22, 3 }
  0x11   : > { %756 = vmatprep.subr.bf16.mxu0 %v797_v7  ;;  %v807_v13 = vld [vmem:[%s904_s26] sm:$0xff]   ;;  %742 = vmatprep.mubr.bf16.mxu1 %v806_v12  ;;  %v809_v19 = vld [vmem:[%s904_s26 + $0x8] sm:$0xff]   ;;  %v811_v21 = vld [vmem:[%s904_s26 + $0x10] sm:$0xff]   ;;  %s936_s17 = scalar_lea.vmem %s954_s5, %s674_s12 }
  0x12   : > { %766 = vmatprep.mubr.bf16.mxu0 %v807_v13  ;;  %v812_v22 = vld [vmem:[%s896_s20 + $0x18] sm:$0xff]  }
  0x13   : > { %733 = vmatpush3.bf16.msra.mxu1 %v796_v6  ;;  %v813_v23 = vld [vmem:[%s904_s26 + $0x18] sm:$0xff]  }
  0x14   : > { %757 = vmatpush3.bf16.msra.mxu0 %v797_v7  ;;  %734 = vmatprep.subr.bf16.mxu1 %v798_v8 }
  0x15   : > { %758 = vmatprep.subr.bf16.mxu0 %v799_v9 }
  0x17   : > { %735 = vmatpush3.bf16.msra.mxu1 %v798_v8 }
  0x18   : > { %759 = vmatpush3.bf16.msra.mxu0 %v799_v9  ;;  %736 = vmatprep.subr.bf16.mxu1 %v800_v10 }
  0x19   : > { %760 = vmatprep.subr.bf16.mxu0 %v801_v11 }
  0x1b   : > { %737 = vmatpush3.bf16.msra.mxu1 %v800_v10 }
  0x1c   : > { %761 = vmatpush3.bf16.msra.mxu0 %v801_v11  ;;  %738 = vmatprep.subr.bf16.mxu1 %v802_v14 }
  0x1d   : > { %762 = vmatprep.subr.bf16.mxu0 %v803_v15 }
  0x1f   : > { %739 = vmatpush3.bf16.msra.mxu1 %v802_v14 }
  0x20   : > { %763 = vmatpush3.bf16.msra.mxu0 %v803_v15  ;;  %740 = vmatprep.subr.bf16.mxu1 %v804_v16 }
  0x21   : > { %764 = vmatprep.subr.bf16.mxu0 %v805_v17 }
  0x23   : > { %741 = vmatpush3.bf16.msra.mxu1 %v804_v16 }
  0x24   : > { %765 = vmatpush3.bf16.msra.mxu0 %v805_v17 }
  0x26   : > { %743 = vmatmul.mubr.bf16.vlgmr.msra.gmra.mrb[0].mxu1 %v808_v18 }
  0x27   : > { %767 = vmatmul.mubr.bf16.vlgmr.msra.gmra.mrb[0].mxu0 %v809_v19  ;;  %746 = vmatprep.mubr.bf16.mxu1 %v810_v20 }
  0x28   : > { %770 = vmatprep.mubr.bf16.mxu0 %v811_v21 }
  0x2e   : > { %747 = vmatmul.mubr.bf16.gmra.mrb[4].mxu1 %v812_v22 }
  0x2f   : > { %771 = vmatmul.mubr.bf16.gmra.mrb[4].mxu0 %v813_v23 }
  0xf9   : > { %v744_v24 = vpop.f32.mrb[0].mxu1 }
  0xfa   : > { %v768_v25 = vpop.f32.mrb[0].mxu0  ;;  %v405_v27 = vpop.f32.mrb[1].mxu1 }
  0xfb   : > { %v551_v28 = vadd.f32 %v768_v25, %v744_v24  ;;  %v542_v29 = vpop.f32.mrb[1].mxu0  ;;  %v745_v30 = vpop.f32.mrb[2].mxu1 }
  0xfc   : > { %v543_v31 = vadd.f32 %v542_v29, %v405_v27  ;;  %v769_v32 = vpop.f32.mrb[2].mxu0  ;;  %v408_v33 = vpop.f32.mrb[3].mxu1 }
  0xfd   : > { %v582_v34 = vadd.f32 %v699_v26, %v551_v28  ;;  %v554_v35 = vadd.f32 %v769_v32, %v745_v30  ;;  %v545_v36 = vpop.f32.mrb[3].mxu0 }
  0xfe   : > { %v580_v37 = vadd.f32 %v699_v26, %v543_v31  ;;  %v546_v38 = vadd.f32 %v545_v36, %v408_v33 }
  0xff   : > { %590 = vst [vmem:[%s936_s17 + $0x10] sm:$0xff] %v582_v34  ;;  %v583_v39 = vadd.f32 %v699_v26, %v554_v35 }
 0x100   : > { %588 = vst [vmem:[%s936_s17] sm:$0xff] %v580_v37  ;;  %v581_v40 = vadd.f32 %v699_v26, %v546_v38 }
 0x101   : > { %591 = vst [vmem:[%s936_s17 + $0x18] sm:$0xff] %v583_v39  ;;  %v748_v41 = vpop.f32.mrb[4].mxu1 }
 0x102   : > { %589 = vst [vmem:[%s936_s17 + $0x8] sm:$0xff] %v581_v40  ;;  %v772_v42 = vpop.f32.mrb[4].mxu0  ;;  %v421_v43 = vpop.f32.mrb[5].mxu1 }
 0x103   : > { %v567_v44 = vadd.f32 %v772_v42, %v748_v41  ;;  %v558_v45 = vpop.f32.mrb[5].mxu0  ;;  %v749_v46 = vpop.f32.mrb[6].mxu1 }
 0x104   : > { %v559_v47 = vadd.f32 %v558_v45, %v421_v43  ;;  %v773_v48 = vpop.f32.mrb[6].mxu0  ;;  %v424_v49 = vpop.f32.mrb[7].mxu1 }
 0x105   : > { %v586_v50 = vadd.f32 %v699_v26, %v567_v44  ;;  %v570_v51 = vadd.f32 %v773_v48, %v749_v46  ;;  %v561_v52 = vpop.f32.mrb[7].mxu0 }
 0x106   : > { %v584_v53 = vadd.f32 %v699_v26, %v559_v47  ;;  %v562_v54 = vadd.f32 %v561_v52, %v424_v49 }
 0x107   : > { %594 = vst [vmem:[%s936_s17 + $0x30] sm:$0xff] %v586_v50  ;;  %v587_v55 = vadd.f32 %v699_v26, %v570_v51 }
 0x108   : > { %592 = vst [vmem:[%s936_s17 + $0x20] sm:$0xff] %v584_v53  ;;  %v585_v56 = vadd.f32 %v699_v26, %v562_v54 }
 0x109   : > { %595 = vst [vmem:[%s936_s17 + $0x38] sm:$0xff] %v587_v55 }
 0x10a   : > { %593 = vst [vmem:[%s936_s17 + $0x28] sm:$0xff] %v585_v56 }
 0x10b PF: > { %s15_s18 = sadd.s32 1, %s820_s18  }
 0x10c   : > { %p12_p4 = scmp.ge.s32.totalorder %s15_s18, 4  }
 0x10e   :  { %14 = sbr.rel (!%p12_p4) target bundleno = 1 (0x1), region = 73 }

</bundles_post_ra>
